<compile_context>
chip_gen: v7x
topology: tpu7x:2x2x1
jax: 0.10.0
libtpu: 0.0.40
codegen_flags: <defaults>
</compile_context>

<pallas_src>
import functools
import math

import jax
import jax.numpy as jnp
from jax import lax
from jax.experimental import pallas as pl
from jax.experimental.pallas import tpu as pltpu

STDDEV = 0.125
COLS = 1024            # lane-dense slab width (multiple of 128)
MAX_BLOCK_ROWS = 512   # 512 x 1024 x 4B = 2 MiB/block; in+out double-buffered = 8 MiB


def _mix32(v):
    """murmur3-style finalizer: full-avalanche uint32 -> uint32 hash."""
    v = (v ^ (v >> 16)) * jnp.uint32(0x85EBCA6B)
    v = (v ^ (v >> 13)) * jnp.uint32(0xC2B2AE35)
    v = v ^ (v >> 16)
    return v


def gaussian_noise_kernel(seed_ref, x_ref, o_ref, *, stddev, block_rows):
    """out = x * (N(0,1) * stddev), noise from a counter-based hash PRNG."""
    i = pl.program_id(0)
    rows = x_ref.shape[0]
    half = x_ref.shape[1] // 2

    seed = seed_ref[0].astype(jnp.uint32)

    # One counter per *pair* of output elements (col c pairs with col c+half).
    row_ids = lax.broadcasted_iota(jnp.int32, (rows, half), 0)
    col_ids = lax.broadcasted_iota(jnp.int32, (rows, half), 1)
    base = i * block_rows * half
    pair_idx = (base + row_ids * half + col_ids).astype(jnp.uint32)

    # TODO(synk): adjacent counters through a single finalizer are fine for
    # noise injection but are not a cryptographic-quality stream.
    k = pair_idx + seed * jnp.uint32(0x9E3779B9)
    bits1 = _mix32(k ^ jnp.uint32(0x68BC21EB))
    bits2 = _mix32(k ^ jnp.uint32(0x02E5BE93))

    # Top 24 bits -> uniforms. u1 in (0,1) so log(u1) is finite; u2 in [0,1).
    inv24 = jnp.float32(1.0 / (1 << 24))
    u1 = ((bits1 >> 8).astype(jnp.int32).astype(jnp.float32) + jnp.float32(0.5)) * inv24
    u2 = (bits2 >> 8).astype(jnp.int32).astype(jnp.float32) * inv24

    # Box-Muller; fold stddev into the radius once.
    r = jnp.sqrt(jnp.float32(-2.0) * jnp.log(u1)) * jnp.float32(stddev)
    theta = jnp.float32(2.0 * math.pi) * u2
    noise_lo = r * jnp.cos(theta)
    noise_hi = r * jnp.sin(theta)

    x = x_ref[...].astype(jnp.float32)
    o_ref[:, :half] = (x[:, :half] * noise_lo).astype(o_ref.dtype)
    o_ref[:, half:] = (x[:, half:] * noise_hi).astype(o_ref.dtype)


def gaussian_noise(x, seed: int, stddev: float = STDDEV, training: bool = True):
    """JAX/Pallas equivalent of GaussianNoise.forward."""
    if not training:
        return x  # eval mode: identity (matches the PyTorch module)

    orig_shape = x.shape
    orig_dtype = x.dtype

    flat = x.reshape(-1)
    total = flat.shape[0]

    # Lane-dense 2-D slab (rows, 1024). Pad only if the element count is not a
    # multiple of 1024 (the common power-of-two activation shapes skip this).
    pad = (-total) % COLS
    if pad:
        flat = jnp.pad(flat, (0, pad))
    x2d = flat.reshape(-1, COLS)
    rows = x2d.shape[0]

    if rows <= MAX_BLOCK_ROWS:
        block_rows = rows              # full extent: always a legal block shape
        grid = (1,)
    else:
        block_rows = MAX_BLOCK_ROWS    # multiple of 8; Pallas clips ragged tail
        grid = (pl.cdiv(rows, block_rows),)

    seed_arr = jnp.array([seed], dtype=jnp.int32)

    out2d = pl.pallas_call(
        functools.partial(gaussian_noise_kernel, stddev=stddev, block_rows=block_rows),
        out_shape=jax.ShapeDtypeStruct(x2d.shape, orig_dtype),
        grid_spec=pltpu.PrefetchScalarGridSpec(
            num_scalar_prefetch=1,
            grid=grid,
            in_specs=[pl.BlockSpec((block_rows, COLS), lambda i, seed: (i, 0))],
            out_specs=pl.BlockSpec((block_rows, COLS), lambda i, seed: (i, 0)),
        ),
        compiler_params=pltpu.CompilerParams(
            # Counter-based PRNG -> grid steps are independent -> megacore-friendly.
            dimension_semantics=("parallel",),
        ),
    )(seed_arr, x2d)

    out_flat = out2d.reshape(-1)
    if pad:
        out_flat = out_flat[:total]
    return out_flat.reshape(orig_shape)


if __name__ == "__main__":
    key = jax.random.PRNGKey(0)
    x = jax.random.normal(key, (2, 4, 16, 16), dtype=jnp.float32)  # NCHW

    # training=True path (the actual kernel)
    y = jax.block_until_ready(gaussian_noise(x, seed=0, stddev=STDDEV, training=True))
    assert y.shape == x.shape and y.dtype == x.dtype
    assert bool(jnp.all(jnp.isfinite(y)))

    # out / x recovers z*stddev ~ N(0, stddev^2): loose statistical sanity check.
    z = y / x
    assert abs(float(jnp.mean(z))) < 0.05
    assert 0.09 < float(jnp.std(z)) < 0.16

    # eval path is identity
    y_eval = jax.block_until_ready(gaussian_noise(x, seed=0, training=False))
    assert bool(jnp.all(y_eval == x))

    print("KERNEL_OK")
</pallas_src>

<mosaic_0001>
module attributes {stable_mosaic.version = 11 : i64} {
  func.func @gaussian_noise_kernel(%arg0: i32, %arg1: memref<1xi32, #tpu.memory_space<smem>>, %arg2: memref<2x1024xf32, #tpu.memory_space<vmem>>, %arg3: memref<2x1024xf32, #tpu.memory_space<vmem>>) attributes {dimension_semantics = [#tpu.dimension_semantics<parallel>], iteration_bounds = array<i64: 1>, scalar_prefetch = 1 : i64, scratch_operands = 0 : i64, tpu.core_type = #tpu.core_type<tc>, window_params = [{transform_indices = @transform_0, window_bounds = array<i64: 2, 1024>}, {transform_indices = @transform_1, window_bounds = array<i64: 2, 1024>}]} {
    %c0 = arith.constant 0 : index
    %0 = memref.load %arg1[%c0] : memref<1xi32, #tpu.memory_space<smem>>
    %1 = tpu.iota {dimensions = array<i32: 0>} : vector<2x512xi32>
    %2 = tpu.iota {dimensions = array<i32: 1>} : vector<2x512xi32>
    %c2_i32 = arith.constant 2 : i32
    %3 = arith.muli %arg0, %c2_i32 : i32
    %c512_i32 = arith.constant 512 : i32
    %4 = arith.muli %3, %c512_i32 : i32
    %c512_i32_0 = arith.constant 512 : i32
    %5 = vector.broadcast %c512_i32_0 : i32 to vector<2x512xi32>
    %6 = arith.muli %1, %5 : vector<2x512xi32>
    %7 = vector.broadcast %4 : i32 to vector<2x512xi32>
    %8 = arith.addi %7, %6 : vector<2x512xi32>
    %9 = arith.addi %8, %2 : vector<2x512xi32>
    %c-1640531527_i32 = arith.constant -1640531527 : i32
    %10 = arith.muli %0, %c-1640531527_i32 : i32
    %11 = vector.broadcast %10 : i32 to vector<2x512xi32>
    %12 = arith.addi %9, %11 : vector<2x512xi32>
    %c1757159915_i32 = arith.constant 1757159915 : i32
    %13 = vector.broadcast %c1757159915_i32 : i32 to vector<2x512xi32>
    %14 = arith.xori %12, %13 : vector<2x512xi32>
    %c16_i32 = arith.constant 16 : i32
    %15 = vector.broadcast %c16_i32 : i32 to vector<2x512xi32>
    %16 = arith.shrui %14, %15 : vector<2x512xi32>
    %17 = arith.xori %14, %16 : vector<2x512xi32>
    %c-2048144789_i32 = arith.constant -2048144789 : i32
    %18 = vector.broadcast %c-2048144789_i32 : i32 to vector<2x512xi32>
    %19 = arith.muli %17, %18 : vector<2x512xi32>
    %c13_i32 = arith.constant 13 : i32
    %20 = vector.broadcast %c13_i32 : i32 to vector<2x512xi32>
    %21 = arith.shrui %19, %20 : vector<2x512xi32>
    %22 = arith.xori %19, %21 : vector<2x512xi32>
    %c-1028477387_i32 = arith.constant -1028477387 : i32
    %23 = vector.broadcast %c-1028477387_i32 : i32 to vector<2x512xi32>
    %24 = arith.muli %22, %23 : vector<2x512xi32>
    %c16_i32_1 = arith.constant 16 : i32
    %25 = vector.broadcast %c16_i32_1 : i32 to vector<2x512xi32>
    %26 = arith.shrui %24, %25 : vector<2x512xi32>
    %27 = arith.xori %24, %26 : vector<2x512xi32>
    %c48610963_i32 = arith.constant 48610963 : i32
    %28 = vector.broadcast %c48610963_i32 : i32 to vector<2x512xi32>
    %29 = arith.xori %12, %28 : vector<2x512xi32>
    %c16_i32_2 = arith.constant 16 : i32
    %30 = vector.broadcast %c16_i32_2 : i32 to vector<2x512xi32>
    %31 = arith.shrui %29, %30 : vector<2x512xi32>
    %32 = arith.xori %29, %31 : vector<2x512xi32>
    %c-2048144789_i32_3 = arith.constant -2048144789 : i32
    %33 = vector.broadcast %c-2048144789_i32_3 : i32 to vector<2x512xi32>
    %34 = arith.muli %32, %33 : vector<2x512xi32>
    %c13_i32_4 = arith.constant 13 : i32
    %35 = vector.broadcast %c13_i32_4 : i32 to vector<2x512xi32>
    %36 = arith.shrui %34, %35 : vector<2x512xi32>
    %37 = arith.xori %34, %36 : vector<2x512xi32>
    %c-1028477387_i32_5 = arith.constant -1028477387 : i32
    %38 = vector.broadcast %c-1028477387_i32_5 : i32 to vector<2x512xi32>
    %39 = arith.muli %37, %38 : vector<2x512xi32>
    %c16_i32_6 = arith.constant 16 : i32
    %40 = vector.broadcast %c16_i32_6 : i32 to vector<2x512xi32>
    %41 = arith.shrui %39, %40 : vector<2x512xi32>
    %42 = arith.xori %39, %41 : vector<2x512xi32>
    %c8_i32 = arith.constant 8 : i32
    %43 = vector.broadcast %c8_i32 : i32 to vector<2x512xi32>
    %44 = arith.shrui %27, %43 : vector<2x512xi32>
    %45 = arith.sitofp %44 : vector<2x512xi32> to vector<2x512xf32>
    %cst = arith.constant 5.000000e-01 : f32
    %46 = vector.broadcast %cst : f32 to vector<2x512xf32>
    %47 = arith.addf %45, %46 : vector<2x512xf32>
    %cst_7 = arith.constant 5.96046448E-8 : f32
    %48 = vector.broadcast %cst_7 : f32 to vector<2x512xf32>
    %49 = arith.mulf %47, %48 : vector<2x512xf32>
    %c8_i32_8 = arith.constant 8 : i32
    %50 = vector.broadcast %c8_i32_8 : i32 to vector<2x512xi32>
    %51 = arith.shrui %42, %50 : vector<2x512xi32>
    %52 = arith.sitofp %51 : vector<2x512xi32> to vector<2x512xf32>
    %cst_9 = arith.constant 5.96046448E-8 : f32
    %53 = vector.broadcast %cst_9 : f32 to vector<2x512xf32>
    %54 = arith.mulf %52, %53 : vector<2x512xf32>
    %55 = math.log %49 : vector<2x512xf32>
    %cst_10 = arith.constant -2.000000e+00 : f32
    %56 = vector.broadcast %cst_10 : f32 to vector<2x512xf32>
    %57 = arith.mulf %56, %55 : vector<2x512xf32>
    %58 = math.sqrt %57 : vector<2x512xf32>
    %cst_11 = arith.constant 1.250000e-01 : f32
    %59 = vector.broadcast %cst_11 : f32 to vector<2x512xf32>
    %60 = arith.mulf %58, %59 : vector<2x512xf32>
    %cst_12 = arith.constant 6.28318548 : f32
    %61 = vector.broadcast %cst_12 : f32 to vector<2x512xf32>
    %62 = arith.mulf %61, %54 : vector<2x512xf32>
    %63 = math.cos %62 : vector<2x512xf32>
    %64 = arith.mulf %60, %63 : vector<2x512xf32>
    %65 = math.sin %62 : vector<2x512xf32>
    %66 = arith.mulf %60, %65 : vector<2x512xf32>
    %c0_13 = arith.constant 0 : index
    %c0_14 = arith.constant 0 : index
    %67 = vector.load %arg2[%c0_13, %c0_14] : memref<2x1024xf32, #tpu.memory_space<vmem>>, vector<2x1024xf32>
    %68 = vector.extract_strided_slice %67 {offsets = [0, 0], sizes = [2, 512], strides = [1, 1]} : vector<2x1024xf32> to vector<2x512xf32>
    %69 = arith.mulf %68, %64 : vector<2x512xf32>
    %c0_15 = arith.constant 0 : index
    %c0_16 = arith.constant 0 : index
    %70 = vector.load %arg3[%c0_15, %c0_16] : memref<2x1024xf32, #tpu.memory_space<vmem>>, vector<2x512xf32>
    tpu.vector_store %arg3[%c0_15, %c0_16], %69 {strides = array<i32>} : memref<2x1024xf32, #tpu.memory_space<vmem>>, vector<2x512xf32>,
    %71 = vector.extract_strided_slice %67 {offsets = [0, 512], sizes = [2, 512], strides = [1, 1]} : vector<2x1024xf32> to vector<2x512xf32>
    %72 = arith.mulf %71, %66 : vector<2x512xf32>
    %c0_17 = arith.constant 0 : index
    %c512 = arith.constant 512 : index
    %73 = vector.load %arg3[%c0_17, %c512] : memref<2x1024xf32, #tpu.memory_space<vmem>>, vector<2x512xf32>
    tpu.vector_store %arg3[%c0_17, %c512], %72 {strides = array<i32>} : memref<2x1024xf32, #tpu.memory_space<vmem>>, vector<2x512xf32>,
    return
  }
  func.func @transform_0(%arg0: i32, %arg1: memref<1xi32, #tpu.memory_space<smem>>) -> (i32, i32) {
    %c0_i32 = arith.constant 0 : i32
    %c0_i32_0 = arith.constant 0 : i32
    return %arg0, %c0_i32 : i32, i32
  }
  func.func @transform_1(%arg0: i32, %arg1: memref<1xi32, #tpu.memory_space<smem>>) -> (i32, i32) {
    %c0_i32 = arith.constant 0 : i32
    %c0_i32_0 = arith.constant 0 : i32
    return %arg0, %c0_i32 : i32, i32
  }
}

</mosaic_0001>

<bundles_post_ra>
// kernel: tpu_custom_call.1
= control target key start
LH: loop header
LB: loop body
LE: loop exit
PB: predicated region body
PF: predicated region fallthrough
CT: control target
= control target key end

     0   :  { %8 = vsyncpa [#allocation5], 0  ;;  %s1716_s0 = inlined_call_operand.<no memory space> [shape: s32[1], index: 0, kind: input, shape index: {}]   ;;  %s1717_s1 = inlined_call_operand.hbm [shape: f32[2,1024], index: 1, kind: input, shape index: {}]   ;;  %s1718_s2 = inlined_call_operand.hbm [shape: f32[2,1024], index: 2, kind: output, shape index: {}]  }
   0x1   :  { %9 = vsyncpa [#allocation6], 0  ;;  %s1231_s9 = smov [#allocation4]   ;;  %s1183_s13 = scalar_lea.hbm %s1717_s1, 256 }
   0x2   :  { %s16_s10 = sshll.u32 %s1231_s9, 4  ;;  %p1184_p0 = scmp.ne.s32.totalorder %s1717_s1, %s1183_s13  ;;  %s17_s10 = int_to_ptr.vmem [resolvable:$true] %s16_s10 }
   0x3   :  { %p1187_p1 = scmp.lt.u32.totalorder %s1183_s13, %s1717_s1 }
   0x5   :  { %p1189_p2 = pnand %p1187_p1, %p1184_p0 }
   0x7   :  { %1192 = shalt.err (!%p1189_p2)
}
   0x8   :  { %s1193_s18 = scalar_lea.vmem %s17_s10, 256  ;;  %p1198_p4 = scmp.lt.s32.totalorder %s17_s10, %s17_s10 }
   0x9   :  { %p1194_p3 = scmp.ne.s32.totalorder %s17_s10, %s1193_s18  ;;  %p1199_p5 = scmp.lt.s32.totalorder %s1193_s18, %s1193_s18 }
   0xb   :  { %p1200_p6 = por %p1199_p5, %p1198_p4 }
   0xd   :  { %p1201_p7 = pnand %p1200_p6, %p1194_p3 }
   0xf   :  { %1204 = shalt.err (!%p1201_p7)
}
  0x10   :  { %19 = dma.hbm_to_vmem [thread:$0]  %s1717_s1, 256, %s17_s10, [#allocation5]  }
  0x11   :  { %1227 = dma.done.wait [#allocation5], 256  }
  0x12   :  { %1228 = vsyncadd [#allocation5], 4294967040  ;;  %v24_v0 = vlaneseq  ;;  %s39_s23 = smul.u32 2654435769, %s1716_s0  ;;  %s1239_s0 = smov [#allocation7]  }
  0x13   :  { %s1085_s1 = sshll.u32 %s1239_s0, 4  ;;  %s1086_s1 = int_to_ptr.vmem [resolvable:$true] %s1085_s1 }
  0x14   :  { %v1270_v1 = vshrl.u32 %v24_v0, 7  ;;  %v27_v2 = vand.u32 127, %v24_v0  ;;  %v40_v6 = vstv %s39_s23  ;;  %s1205_s24 = scalar_lea.vmem %s1086_s1, 256  ;;  %p1210_p9 = scmp.lt.s32.totalorder %s1086_s1, %s1086_s1 }
  0x15   :  { %p1206_p8 = scmp.ne.s32.totalorder %s1086_s1, %s1205_s24  ;;  %p1211_p10 = scmp.lt.s32.totalorder %s1205_s24, %s1205_s24 }
  0x16   :  { %v28_v3 = vadd.s32 128, %v27_v2  ;;  %v29_v4 = vadd.s32 256, %v27_v2  ;;  %v32_v5 = vmul.u32 512, %v1270_v1  ;;  %v30_v13 = vadd.s32 384, %v27_v2 }
  0x17   :  { %p1212_p11 = por %p1211_p10, %p1210_p9 }
  0x18   :  { %v35_v7 = vadd.s32 %v32_v5, %v27_v2  ;;  %v36_v8 = vadd.s32 %v32_v5, %v28_v3  ;;  %v37_v9 = vadd.s32 %v32_v5, %v29_v4  ;;  %v38_v19 = vadd.s32 %v32_v5, %v30_v13 }
  0x19   :  { %p1213_p12 = pnand %p1212_p11, %p1206_p8 }
  0x1a   :  { %v41_v10 = vadd.s32 %v40_v6, %v35_v7  ;;  %v42_v11 = vadd.s32 %v40_v6, %v36_v8  ;;  %v43_v12 = vadd.s32 %v40_v6, %v37_v9  ;;  %v44_v24 = vadd.s32 %v40_v6, %v38_v19 }
  0x1c   :  { %v81_v14 = vxor.u32 48610963, %v41_v10  ;;  %v82_v15 = vxor.u32 48610963, %v42_v11  ;;  %v83_v16 = vxor.u32 48610963, %v43_v12 }
  0x1d   :  { %v84_v31 = vxor.u32 48610963, %v44_v24  ;;  %v45_v44 = vxor.u32 1757159915, %v41_v10  ;;  %v46_v45 = vxor.u32 1757159915, %v42_v11 }
  0x1e   :  { %v85_v17 = vshrl.u32 %v81_v14, 16  ;;  %v86_v18 = vshrl.u32 %v82_v15, 16  ;;  %v87_v20 = vshrl.u32 %v83_v16, 16  ;;  %v47_v52 = vxor.u32 1757159915, %v43_v12 }
  0x1f   :  { %v88_v38 = vshrl.u32 %v84_v31, 16  ;;  %v48_v53 = vxor.u32 1757159915, %v44_v24  ;;  %v49_v54 = vshrl.u32 %v45_v44, 16  ;;  %v50_v55 = vshrl.u32 %v46_v45, 16 }
  0x20   :  { %v89_v21 = vxor.u32 %v85_v17, %v81_v14  ;;  %v90_v22 = vxor.u32 %v86_v18, %v82_v15  ;;  %v91_v23 = vxor.u32 %v87_v20, %v83_v16  ;;  %v51_v61 = vshrl.u32 %v47_v52, 16 }
  0x21   :  { %v92_v46 = vxor.u32 %v88_v38, %v84_v31  ;;  %v52_v62 = vshrl.u32 %v48_v53, 16  ;;  %v53_v63 = vxor.u32 %v49_v54, %v45_v44  ;;  %v54_v2 = vxor.u32 %v50_v55, %v46_v45 }
  0x22   :  { %v93_v25 = vmul.u32 2246822507, %v89_v21  ;;  %v94_v26 = vmul.u32 2246822507, %v90_v22  ;;  %v55_v7 = vxor.u32 %v51_v61, %v47_v52  ;;  %v1232_v44 = vmov 683565275  }
  0x23   :  { %v95_v27 = vmul.u32 2246822507, %v91_v23  ;;  %v96_v56 = vmul.u32 2246822507, %v92_v46  ;;  %v56_v8 = vxor.u32 %v52_v62, %v48_v53  ;;  %v1233_v46 = vmov 2475754826  }
  0x24   :  { %v97_v28 = vshrl.u32 %v93_v25, 13  ;;  %v98_v29 = vshrl.u32 %v94_v26, 13  ;;  %v57_v9 = vmul.u32 2246822507, %v53_v63  ;;  %v58_v11 = vmul.u32 2246822507, %v54_v2 }
  0x25   :  { %v99_v30 = vshrl.u32 %v95_v27, 13  ;;  %v100_v3 = vshrl.u32 %v96_v56, 13  ;;  %v59_v16 = vmul.u32 2246822507, %v55_v7  ;;  %v60_v17 = vmul.u32 2246822507, %v56_v8 }
  0x26   :  { %v101_v32 = vxor.u32 %v97_v28, %v93_v25  ;;  %v102_v33 = vxor.u32 %v98_v29, %v94_v26  ;;  %v61_v18 = vshrl.u32 %v57_v9, 13  ;;  %v62_v20 = vshrl.u32 %v58_v11, 13 }
  0x27   :  { %v103_v34 = vxor.u32 %v99_v30, %v95_v27  ;;  %v104_v12 = vxor.u32 %v100_v3, %v96_v56  ;;  %v63_v25 = vshrl.u32 %v59_v16, 13  ;;  %v64_v26 = vshrl.u32 %v60_v17, 13 }
  0x28   :  { %v105_v35 = vmul.u32 3266489909, %v101_v32  ;;  %v106_v36 = vmul.u32 3266489909, %v102_v33  ;;  %v1281_v27 = vxor.u32 %v61_v18, %v57_v9  ;;  %v1283_v29 = vxor.u32 %v62_v20, %v58_v11 }
  0x29   :  { %v107_v37 = vmul.u32 3266489909, %v103_v34  ;;  %v108_v21 = vmul.u32 3266489909, %v104_v12  ;;  %v1235_v53 = vmov 2102212464  }
  0x2a   :  { %v109_v39 = vshrl.u32 %v105_v35, 16  ;;  %v110_v40 = vshrl.u32 %v106_v36, 16  ;;  %v1236_v56 = vmov 920167782   ;;  %v1237_v63 = vmov 1326507024  }
  0x2b   :  { %v111_v41 = vshrl.u32 %v107_v37, 16  ;;  %v112_v30 = vshrl.u32 %v108_v21, 16 }
  0x2c   :  { %v113_v42 = vxor.u32 %v109_v39, %v105_v35  ;;  %v114_v43 = vxor.u32 %v110_v40, %v106_v36  ;;  %v1288_v35 = vxor.u32 %v63_v25, %v59_v16  ;;  %v1290_v36 = vxor.u32 %v64_v26, %v60_v17 }
  0x2d   :  { %v115_v49 = vxor.u32 %v111_v41, %v107_v37  ;;  %v69_v37 = vmul.u32 3266489909, %v1281_v27  ;;  %v70_v39 = vmul.u32 3266489909, %v1283_v29  ;;  %v1294_v40 = vxor.u32 %v112_v30, %v108_v21 }
  0x2e   :  { %v133_v47 = vshrl.u32 %v113_v42, 8  ;;  %v134_v48 = vshrl.u32 %v114_v43, 8  ;;  %v71_v21 = vmul.u32 3266489909, %v1288_v35 }
  0x2f   :  { %v135_v59 = vshrl.u32 %v115_v49, 8  ;;  %v73_v25 = vshrl.u32 %v69_v37, 16 }
  0x30   :  { %v137_v50 = vcvt.s32.f32 %v133_v47  ;;  %v138_v51 = vcvt.s32.f32 %v134_v48 }
  0x31   :  { %v139_v5 = vcvt.s32.f32 %v135_v59 }
  0x32   :  { %v141_v57 = vmul.f32 5.9604645e-08, %v137_v50  ;;  %v142_v58 = vmul.f32 5.9604645e-08, %v138_v51  ;;  %v1234_v50 = vmov 2131351028  }
  0x33   :  { %v143_v14 = vmul.f32 5.9604645e-08, %v139_v5 }
  0x34   :  { %v1273_v60 = vmul.f32 6.2831855, %v141_v57  ;;  %v1275_v0 = vmul.f32 6.2831855, %v142_v58 }
  0x35   :  { %v1279_v22 = vmul.f32 6.2831855, %v143_v14 }
  0x36   :  { %v196_v4 = vand.u32 2139095040, %v1273_v60  ;;  %v299_v10 = vand.u32 2139095040, %v1275_v0  ;;  %v193_v31 = vand.u32 2147483647, %v1273_v60  ;;  %v296_v32 = vand.u32 2147483647, %v1275_v0 }
  0x37   :  { %v402_v34 = vand.u32 2139095040, %v1279_v22 }
  0x38   :  { %v197_v6 = vshrl.u32 %v196_v4, 23  ;;  %v300_v19 = vshrl.u32 %v299_v10, 23  ;;  %v200_v41 = vand.u32 8388607, %v193_v31  ;;  %v303_v42 = vand.u32 8388607, %v296_v32 }
  0x39   :  { %v403_v48 = vshrl.u32 %v402_v34, 23  ;;  %v136_v34 = vshrl.u32 %v1294_v40, 8 }
  0x3a   :  { %v1094_v13 = vadd.s32 4294967169, %v197_v6  ;;  %v1098_v28 = vadd.s32 4294967169, %v300_v19  ;;  %v201_v5 = vor.u32 8388608, %v200_v41  ;;  %v304_v9 = vor.u32 8388608, %v303_v42 }
  0x3b   :  { %v1102_v11 = vadd.s32 4294967169, %v403_v48 }
  0x3c   :  { %v203_v15 = vadd.s32 1, %v1094_v13  ;;  %v306_v38 = vadd.s32 1, %v1098_v28  ;;  %v241_v19 = vshll.u32 %v201_v5, 8 }
  0x3d   :  { %v409_v41 = vadd.s32 1, %v1102_v11 }
  0x3e   :  { %vm204_vm0 = vcmp.gt.s32.totalorder %v203_v15, 0  ;;  %vm307_vm1 = vcmp.gt.s32.totalorder %v306_v38, 0 }
  0x3f   :  { %v205_v23 = vsel %vm204_vm0, %v203_v15, 0  ;;  %v308_v10 = vsel %vm307_vm1, %v306_v38, 0  ;;  %v1321_v38 = vshll.u32 %v304_v9, 8  ;;  %vm410_vm11 = vcmp.gt.s32.totalorder %v409_v41, 0 }
  0x40   :  { %v207_v24 = vand.u32 31, %v205_v23  ;;  %v206_v43 = vshrl.u32 %v205_v23, 5  ;;  %v310_v20 = vand.u32 31, %v308_v10  ;;  %v72_v23 = vmul.u32 3266489909, %v1290_v36 }
  0x42   :  { %v208_v33 = vsub.s32 32, %v207_v24  ;;  %v210_v45 = vshll.u32 %v1232_v44, %v207_v24  ;;  %v213_v49 = vshll.u32 %v1233_v46, %v207_v24  ;;  %v216_v52 = vshll.u32 %v1234_v50, %v207_v24 }
  0x43   :  { %v219_v55 = vshll.u32 %v1235_v53, %v207_v24  ;;  %v222_v58 = vshll.u32 %v1236_v56, %v207_v24  ;;  %vm225_vm2 = vcmp.lt.s32.totalorder %v206_v43, 1  ;;  %vm228_vm3 = vcmp.lt.s32.totalorder %v206_v43, 4 }
  0x44   :  { %v211_v47 = vshrl.u32 %v1233_v46, %v208_v33  ;;  %v214_v51 = vshrl.u32 %v1234_v50, %v208_v33  ;;  %v217_v54 = vshrl.u32 %v1235_v53, %v208_v33  ;;  %v220_v57 = vshrl.u32 %v1236_v56, %v208_v33 }
  0x45   :  { %v209_v59 = vshrl.u32 %v1232_v44, %v208_v33  ;;  %v223_v2 = vshrl.u32 %v1237_v63, %v208_v33  ;;  %vm227_vm4 = vcmp.lt.s32.totalorder %v206_v43, 3  ;;  %vm226_vm5 = vcmp.lt.s32.totalorder %v206_v43, 2 }
  0x46   :  { %v215_v61 = vor.u32 %v214_v51, %v213_v49  ;;  %v218_v62 = vor.u32 %v217_v54, %v216_v52  ;;  %v212_v3 = vor.u32 %v211_v47, %v210_v45  ;;  %v221_v4 = vor.u32 %v220_v57, %v219_v55 }
  0x47   :  { %v224_v6 = vor.u32 %v223_v2, %v222_v58  ;;  %v311_v30 = vsub.s32 32, %v310_v20  ;;  %v1318_v33 = vshrl.u32 %v70_v39, 16  ;;  %v309_v45 = vshrl.u32 %v308_v10, 5 }
  0x48   :  { %v230_v7 = vsel %vm228_vm3, %v218_v62, 2102212464  ;;  %v234_v8 = vsel %vm228_vm3, %v221_v4, 920167782  ;;  %v229_v12 = vsel %vm225_vm2, %v209_v59, %v212_v3  ;;  %v237_v13 = vsel %vm225_vm2, %v215_v61, %v218_v62 }
  0x49   :  { %v238_v14 = vsel %vm228_vm3, %v224_v6, 1326507024  ;;  %v231_v15 = vsel %vm227_vm4, %v215_v61, %v230_v7  ;;  %v233_v16 = vsel %vm225_vm2, %v212_v3, %v215_v61  ;;  %v235_v17 = vsel %vm227_vm4, %v218_v62, %v234_v8 }
  0x4a   :  { %v239_v18 = vsel %vm227_vm4, %v221_v4, %v238_v14  ;;  %v232_v26 = vsel %vm226_vm5, %v229_v12, %v231_v15  ;;  %v236_v28 = vsel %vm226_vm5, %v233_v16, %v235_v17  ;;  %v313_v47 = vshll.u32 %v1232_v44, %v310_v20 }
  0x4b   :  { %v240_v24 = vsel %vm226_vm5, %v237_v13, %v239_v18  ;;  %v1327_v48 = vmul.u32.u64.low %v241_v19, %v236_v28  ;;  %v1328_v49 = vmul.u32.u64.high %v241_v19, %v236_v28, %v1327_v48  ;;  %v248_v51 = vmul.u32 %v241_v19, %v232_v26 }
  0x4c   :  { %v1323_v42 = vmul.u32.u64.low %v241_v19, %v240_v24  ;;  %v1324_v43 = vmul.u32.u64.high %v241_v19, %v240_v24, %v1323_v42  ;;  %v312_v52 = vshrl.u32 %v1232_v44, %v311_v30  ;;  %v314_v54 = vshrl.u32 %v1233_v46, %v311_v30 }
  0x4d   :  { %v316_v40 = vshll.u32 %v1233_v46, %v310_v20  ;;  %v317_v55 = vshrl.u32 %v1234_v50, %v311_v30  ;;  %v319_v57 = vshll.u32 %v1234_v50, %v310_v20  ;;  %v320_v58 = vshrl.u32 %v1235_v53, %v311_v30 }
  0x4e   :  { %v322_v59 = vshll.u32 %v1235_v53, %v310_v20  ;;  %v323_v61 = vshrl.u32 %v1236_v56, %v311_v30  ;;  %v325_v62 = vshll.u32 %v1236_v56, %v310_v20  ;;  %vm250_vm6 = vc.u32 %v1324_v43, %v1327_v48 }
  0x4f   :  { %v315_v2 = vor.u32 %v314_v54, %v313_v47  ;;  %v318_v3 = vor.u32 %v317_v55, %v316_v40  ;;  %vm328_vm7 = vcmp.lt.s32.totalorder %v309_v45, 1  ;;  %v251_v4 = vadd.s32 1, %v1328_v49 }
  0x50   :  { %v321_v5 = vor.u32 %v320_v58, %v319_v57  ;;  %v324_v6 = vor.u32 %v323_v61, %v322_v59  ;;  %v326_v7 = vshrl.u32 %v1237_v63, %v311_v30  ;;  %vm329_vm8 = vcmp.lt.s32.totalorder %v309_v45, 2 }
  0x51   :  { %vm330_vm9 = vcmp.lt.s32.totalorder %v309_v45, 3  ;;  %vm331_vm10 = vcmp.lt.s32.totalorder %v309_v45, 4  ;;  %v332_v8 = vsel %vm328_vm7, %v312_v52, %v315_v2  ;;  %v252_v9 = vsel %vm250_vm6, %v251_v4, %v1328_v49 }
  0x52   :  { %v327_v10 = vor.u32 %v326_v7, %v325_v62  ;;  %v333_v11 = vsel %vm331_vm10, %v321_v5, 2102212464  ;;  %v336_v12 = vsel %vm328_vm7, %v315_v2, %v318_v3  ;;  %v253_v13 = vadd.s32 %v252_v9, %v248_v51 }
  0x53   :  { %v334_v14 = vsel %vm330_vm9, %v318_v3, %v333_v11  ;;  %v337_v15 = vsel %vm331_vm10, %v324_v6, 920167782  ;;  %v340_v16 = vsel %vm328_vm7, %v318_v3, %v321_v5  ;;  %v140_v17 = vcvt.s32.f32 %v136_v34 }
  0x54   :  { %v338_v18 = vsel %vm330_vm9, %v321_v5, %v337_v15  ;;  %v341_v19 = vsel %vm331_vm10, %v327_v10, 1326507024  ;;  %v254_v20 = vadd.s32 536870912, %v253_v13  ;;  %v335_v24 = vsel %vm329_vm8, %v332_v8, %v334_v14 }
  0x55   :  { %v339_v26 = vsel %vm329_vm8, %v336_v12, %v338_v18  ;;  %v342_v28 = vsel %vm330_vm9, %v324_v6, %v341_v19  ;;  %v411_v49 = vsel %vm410_vm11, %v409_v41, 0  ;;  %v75_v34 = vshrl.u32 %v71_v21, 16 }
  0x56   :  { %v343_v30 = vsel %vm329_vm8, %v340_v16, %v342_v28  ;;  %v1355_v42 = vmul.u32.u64.low %v1321_v38, %v339_v26  ;;  %v1356_v47 = vmul.u32.u64.high %v1321_v38, %v339_v26, %v1355_v42  ;;  %v1361_v51 = vshrl.u32 %v254_v20, 30 }
  0x57   :  { %v1364_v52 = vmul.u32.u64.low %v1321_v38, %v343_v30  ;;  %v1365_v54 = vmul.u32.u64.high %v1321_v38, %v343_v30, %v1364_v52  ;;  %v76_v40 = vshrl.u32 %v72_v23, 16  ;;  %v77_v45 = vxor.u32 %v73_v25, %v69_v37 }
  0x58   :  { %v144_v55 = vmul.f32 5.9604645e-08, %v140_v17  ;;  %v413_v57 = vand.u32 31, %v411_v49  ;;  %v256_v58 = vshll.u32 %v1361_v51, 30  ;;  %v351_v41 = vmul.u32 %v1321_v38, %v335_v24 }
  0x59   :  { %v399_v59 = vand.u32 2147483647, %v1279_v22  ;;  %v354_v61 = vadd.s32 1, %v1356_v47  ;;  %v78_v2 = vxor.u32 %v1318_v33, %v70_v39  ;;  %v79_v3 = vxor.u32 %v75_v34, %v71_v21 }
  0x5a   :  { %v414_v62 = vsub.s32 32, %v413_v57  ;;  %v1380_v27 = vsub.s32 %v253_v13, %v256_v58  ;;  %vm353_vm12 = vc.u32 %v1365_v54, %v1355_v42  ;;  %v80_v37 = vxor.u32 %v76_v40, %v72_v23 }
  0x5b   :  { %v117_v25 = vshrl.u32 %v77_v45, 8  ;;  %v1386_v38 = vmul.f32 6.2831855, %v144_v55  ;;  %v355_v4 = vsel %vm353_vm12, %v354_v61, %v1356_v47  ;;  %v406_v35 = vand.u32 8388607, %v399_v59 }
  0x5c   :  { %v259_v29 = vsub.s32 0, %v1380_v27  ;;  %v356_v5 = vadd.s32 %v355_v4, %v351_v41  ;;  %v1392_v39 = vshrl.u32 %v411_v49, 5  ;;  %v416_v21 = vshll.u32 %v1232_v44, %v413_v57 }
  0x5d   :  { %v417_v33 = vshrl.u32 %v1233_v46, %v414_v62  ;;  %v419_v36 = vshll.u32 %v1233_v46, %v413_v57  ;;  %v425_v23 = vshll.u32 %v1235_v53, %v413_v57  ;;  %v420_v7 = vshrl.u32 %v1234_v50, %v414_v62 }
  0x5e   :  { %v1095_v6 = vmin.u32 %v259_v29, %v1380_v27  ;;  %v422_v8 = vshll.u32 %v1234_v50, %v413_v57  ;;  %v423_v9 = vshrl.u32 %v1235_v53, %v414_v62  ;;  %v118_v10 = vshrl.u32 %v78_v2, 8 }
  0x5f   :  { %v119_v11 = vshrl.u32 %v79_v3, 8  ;;  %v357_v12 = vadd.s32 536870912, %v356_v5  ;;  %v426_v13 = vshrl.u32 %v1236_v56, %v414_v62  ;;  %v407_v14 = vor.u32 8388608, %v406_v35 }
  0x60   :  { %v428_v15 = vshll.u32 %v1236_v56, %v413_v57  ;;  %v429_v16 = vshrl.u32 %v1237_v63, %v414_v62  ;;  %v505_v17 = vand.u32 2139095040, %v1386_v38  ;;  %vm431_vm13 = vcmp.lt.s32.totalorder %v1392_v39, 1 }
  0x61   :  { %v1406_v18 = vshrl.u32 %v357_v12, 30  ;;  %v427_v19 = vor.u32 %v426_v13, %v425_v23  ;;  %vm434_vm14 = vcmp.lt.s32.totalorder %v1392_v39, 4  ;;  %v261_v20 = vclz %v1095_v6 }
  0x62   :  { %v418_v24 = vor.u32 %v417_v33, %v416_v21  ;;  %v421_v26 = vor.u32 %v420_v7, %v419_v36  ;;  %v424_v28 = vor.u32 %v423_v9, %v422_v8  ;;  %v430_v47 = vor.u32 %v429_v16, %v428_v15 }
  0x63   :  { %v359_v30 = vshll.u32 %v1406_v18, 30  ;;  %vm433_vm15 = vcmp.lt.s32.totalorder %v1392_v39, 3  ;;  %v440_v49 = vsel %vm434_vm14, %v427_v19, 920167782  ;;  %v120_v34 = vshrl.u32 %v80_v37, 8 }
  0x64   :  { %v121_v52 = vcvt.s32.f32 %v117_v25  ;;  %v122_v40 = vcvt.s32.f32 %v118_v10  ;;  %v506_v45 = vshrl.u32 %v505_v17, 23  ;;  %v123_v55 = vcvt.s32.f32 %v119_v11 }
  0x65   :  { %v1414_v57 = vsub.s32 %v356_v5, %v359_v30  ;;  %v415_v58 = vshrl.u32 %v1232_v44, %v414_v62  ;;  %vm432_vm0 = vcmp.lt.s32.totalorder %v1392_v39, 2  ;;  %v1096_v41 = vadd.s32 4294967294, %v261_v20 }
  0x66   :  { %v436_v61 = vsel %vm434_vm14, %v424_v28, 2102212464  ;;  %v439_v2 = vsel %vm431_vm13, %v418_v24, %v421_v26  ;;  %v441_v3 = vsel %vm433_vm15, %v424_v28, %v440_v49  ;;  %v443_v25 = vsel %vm431_vm13, %v421_v26, %v424_v28 }
  0x67   :  { %v362_v37 = vsub.s32 0, %v1414_v57  ;;  %v444_v62 = vsel %vm434_vm14, %v430_v47, 1326507024  ;;  %v447_v4 = vshll.u32 %v407_v14, 8  ;;  %v124_v29 = vcvt.s32.f32 %v120_v34 }
  0x68   :  { %v125_v5 = vadd.f32 0.5, %v121_v52  ;;  %v445_v35 = vsel %vm433_vm15, %v427_v19, %v444_v62  ;;  %v1106_v21 = vadd.s32 4294967169, %v506_v45  ;;  %v435_v36 = vsel %vm431_vm13, %v415_v58, %v418_v24 }
  0x69   :  { %v1099_v33 = vmin.u32 %v362_v37, %v1414_v57  ;;  %v437_v23 = vsel %vm433_vm15, %v421_v26, %v436_v61  ;;  %v442_v6 = vsel %vm432_vm0, %v439_v2, %v441_v3  ;;  %v126_v7 = vadd.f32 0.5, %v122_v40 }
  0x6a   :  { %v127_v8 = vadd.f32 0.5, %v123_v55  ;;  %vm1097_vm1 = vcmp.lt.s32.totalorder %v1096_v41, 0  ;;  %v446_v9 = vsel %vm432_vm0, %v443_v25, %v445_v35  ;;  %v512_v13 = vadd.s32 1, %v1106_v21 }
  0x6b   :  { %v364_v10 = vclz %v1099_v33  ;;  %v1440_v11 = vmul.u32.u64.low %v447_v4, %v446_v9  ;;  %v1441_v12 = vmul.u32.u64.high %v447_v4, %v446_v9, %v1440_v11  ;;  %v128_v14 = vadd.f32 0.5, %v124_v29 }
  0x6c   :  { %v438_v15 = vsel %vm432_vm0, %v435_v36, %v437_v23  ;;  %v1445_v16 = vmul.u32.u64.low %v447_v4, %v442_v6  ;;  %v1446_v17 = vmul.u32.u64.high %v447_v4, %v442_v6, %v1445_v16  ;;  %v129_v19 = vmul.f32 5.9604645e-08, %v125_v5 }
  0x6d   :  { %vm513_vm2 = vcmp.gt.s32.totalorder %v512_v13, 0  ;;  %v130_v20 = vmul.f32 5.9604645e-08, %v126_v7  ;;  %v264_v24 = vsel %vm1097_vm1, 0, %v1096_v41  ;;  %v131_v28 = vmul.f32 5.9604645e-08, %v127_v8 }
  0x6e   :  { %v514_v26 = vsel %vm513_vm2, %v512_v13, 0  ;;  %v1100_v30 = vadd.s32 4294967294, %v364_v10  ;;  %v454_v47 = vmul.u32 %v447_v4, %v438_v15  ;;  %vm456_vm3 = vc.u32 %v1441_v12, %v1445_v16 }
  0x6f   :  { %v132_v49 = vmul.f32 5.9604645e-08, %v128_v14  ;;  %v457_v34 = vadd.s32 1, %v1446_v17  ;;  %v516_v39 = vand.u32 31, %v514_v26  ;;  %1151 = vlog2.f32 %v129_v19 }
  0x70   :  { %v269_v52 = vsub.s32 4294967266, %v264_v24  ;;  %v502_v40 = vand.u32 2147483647, %v1386_v38  ;;  %1153 = vlog2.f32 %v130_v20  ;;  %vm1101_vm4 = vcmp.lt.s32.totalorder %v1100_v30, 0 }
  0x71   :  { %v458_v45 = vsel %vm456_vm3, %v457_v34, %v1446_v17  ;;  %1155 = vlog2.f32 %v131_v28  ;;  %v517_v58 = vsub.s32 32, %v516_v39  ;;  %v249_v41 = vadd.s32 %v1327_v48, %v1324_v43 }
  0x72   :  { %v459_v55 = vadd.s32 %v458_v45, %v454_v47  ;;  %1157 = vlog2.f32 %v132_v49  ;;  %v265_v61 = vsub.s32 32, %v264_v24  ;;  %v270_v2 = vadd.s32 127, %v269_v52 }
  0x73   :  { %v509_v37 = vand.u32 8388607, %v502_v40  ;;  %v1458_v25 = vsel %vm1101_vm4, 0, %v1100_v30  ;;  %v1460_v62 = vshrl.u32 %v514_v26, 5  ;;  %v519_v4 = vshll.u32 %v1232_v44, %v516_v39 }
  0x74   :  { %v460_v3 = vadd.s32 536870912, %v459_v55  ;;  %v522_v29 = vshll.u32 %v1233_v46, %v516_v39  ;;  %v520_v35 = vshrl.u32 %v1233_v46, %v517_v58  ;;  %v523_v43 = vshrl.u32 %v1234_v50, %v517_v58 }
  0x75   :  { %v525_v48 = vshll.u32 %v1234_v50, %v516_v39  ;;  %v526_v21 = vshrl.u32 %v1235_v53, %v517_v58  ;;  %v528_v33 = vshll.u32 %v1235_v53, %v516_v39  ;;  %v529_v36 = vshrl.u32 %v1236_v56, %v517_v58 }
  0x76   :  { %v1464_v5 = vshrl.u32 %v460_v3, 30  ;;  %v531_v23 = vshll.u32 %v1236_v56, %v516_v39  ;;  %v266_v6 = vshll.u32 %v1380_v27, %v264_v24  ;;  %v267_v7 = vshrl.u32 %v249_v41, %v265_v61 }
  0x77   :  { %v532_v9 = vshrl.u32 %v1237_v63, %v517_v58  ;;  %v271_v46 = vshll.u32 %v270_v2, 23  ;;  %v352_v10 = vadd.s32 %v1355_v42, %v1365_v54  ;;  %v372_v50 = vsub.s32 4294967266, %v1458_v25 }
  0x78   :  { %v462_v8 = vshll.u32 %v1464_v5, 30  ;;  %v530_v11 = vor.u32 %v529_v36, %v528_v33  ;;  %v521_v14 = vor.u32 %v520_v35, %v519_v4  ;;  %v524_v15 = vor.u32 %v523_v43, %v522_v29 }
  0x79   :  { %v1152_v13 = vpop.eup %1151  ;;  %v533_v56 = vor.u32 %v532_v9, %v531_v23  ;;  %v510_v27 = vor.u32 8388608, %v509_v37  ;;  %v527_v19 = vor.u32 %v526_v21, %v525_v48  ;;  %vm534_vm5 = vcmp.lt.s32.totalorder %v1460_v62, 1 }
  0x7a   :  { %v1479_v53 = vsub.s32 %v459_v55, %v462_v8  ;;  %v1154_v17 = vpop.eup %1153  ;;  %vm537_vm6 = vcmp.lt.s32.totalorder %v1460_v62, 4  ;;  %v268_v20 = vor.u32 %v267_v7, %v266_v6  ;;  %v368_v42 = vsub.s32 32, %v1458_v25 }
  0x7b   :  { %v1156_v63 = vpop.eup %1155  ;;  %vm536_vm7 = vcmp.lt.s32.totalorder %v1460_v62, 3  ;;  %v373_v26 = vadd.s32 127, %v372_v50  ;;  %v518_v28 = vshrl.u32 %v1232_v44, %v517_v58  ;;  %vm535_vm8 = vcmp.lt.s32.totalorder %v1460_v62, 2 }
  0x7c   :  { %v465_v54 = vsub.s32 0, %v1479_v53  ;;  %v1158_v24 = vpop.eup %1157  ;;  %v543_v30 = vsel %vm537_vm6, %v530_v11, 920167782  ;;  %v539_v49 = vsel %vm537_vm6, %v527_v19, 2102212464  ;;  %v542_v34 = vsel %vm534_vm5, %v521_v14, %v524_v15 }
  0x7d   :  { %v547_v39 = vsel %vm537_vm6, %v533_v56, 1326507024  ;;  %v272_v52 = vor.u32 4788187, %v271_v46  ;;  %v544_v45 = vsel %vm536_vm7, %v527_v19, %v543_v30  ;;  %v546_v55 = vsel %vm534_vm5, %v524_v15, %v527_v19 }
  0x7e   :  { %v1103_v47 = vmin.u32 %v465_v54, %v1479_v53  ;;  %v550_v41 = vshll.u32 %v510_v27, 8  ;;  %v146_v61 = vmul.f32 0.6931472, %v1152_v13  ;;  %v148_v44 = vmul.f32 0.6931472, %v1154_v17 }
  0x7f   :  { %v369_v58 = vshll.u32 %v1414_v57, %v1458_v25  ;;  %v538_v3 = vsel %vm534_vm5, %v518_v28, %v521_v14  ;;  %v540_v37 = vsel %vm536_vm7, %v524_v15, %v539_v49  ;;  %v545_v4 = vsel %vm535_vm8, %v542_v34, %v544_v45 }
  0x80   :  { %v467_v2 = vclz %v1103_v47  ;;  %v548_v29 = vsel %vm536_vm7, %v530_v11, %v547_v39  ;;  %v370_v35 = vshrl.u32 %v352_v10, %v368_v42  ;;  %v374_v43 = vshll.u32 %v373_v26, 23 }
  0x81   :  { %v549_v21 = vsel %vm535_vm8, %v546_v55, %v548_v29  ;;  %v273_v57 = vand.u32 2147483647, %v272_v52  ;;  %v275_v25 = vcvt.s32.f32 %v268_v20  ;;  %v541_v23 = vsel %vm535_vm8, %v538_v3, %v540_v37 }
  0x82   :  { %v1104_v48 = vadd.s32 4294967294, %v467_v2  ;;  %v1507_v33 = vmul.u32.u64.low %v550_v41, %v549_v21  ;;  %v1508_v36 = vmul.u32.u64.high %v550_v41, %v549_v21, %v1507_v33  ;;  %v1516_v8 = vmul.f32 -2.0, %v146_v61 }
  0x83   :  { %v1512_v6 = vmul.u32.u64.low %v550_v41, %v545_v4  ;;  %v1513_v7 = vmul.u32.u64.high %v550_v41, %v545_v4, %v1512_v6  ;;  %v455_v9 = vadd.s32 %v1445_v16, %v1441_v12  ;;  %v371_v10 = vor.u32 %v370_v35, %v369_v58 }
  0x84   :  { %vm1105_vm9 = vcmp.lt.s32.totalorder %v1104_v48, 0  ;;  %v375_v50 = vor.u32 4788187, %v374_v43  ;;  %v150_v14 = vmul.f32 0.6931472, %v1156_v63  ;;  %v1520_v15 = vmul.f32 -2.0, %v148_v44 }
  0x85   :  { %v470_v46 = vsel %vm1105_vm9, 0, %v1104_v48  ;;  %v557_v56 = vmul.u32 %v550_v41, %v541_v23  ;;  %vm559_vm10 = vc.u32 %v1508_v36, %v1512_v6  ;;  %v276_v62 = vmul.f32 %v275_v25, %v273_v57 }
  0x86   :  { %v471_v11 = vsub.s32 32, %v470_v46  ;;  %v475_v13 = vsub.s32 4294967266, %v470_v46  ;;  %v560_v27 = vadd.s32 1, %v1513_v7  ;;  %v152_v19 = vmul.f32 0.6931472, %v1158_v24 }
  0x87   :  { %1159 = vrsqrt.f32 %v1516_v8  ;;  %v472_v12 = vshll.u32 %v1479_v53, %v470_v46  ;;  %v376_v20 = vand.u32 2147483647, %v375_v50  ;;  %v378_v42 = vcvt.s32.f32 %v371_v10 }
  0x88   :  { %v476_v17 = vadd.s32 127, %v475_v13  ;;  %v473_v16 = vshrl.u32 %v455_v9, %v471_v11  ;;  %v561_v63 = vsel %vm559_vm10, %v560_v27, %v1513_v7  ;;  %v1528_v26 = vmul.f32 -2.0, %v150_v14 }
  0x89   :  { %1161 = vrsqrt.f32 %v1520_v15  ;;  %v562_v28 = vadd.s32 %v561_v63, %v557_v56  ;;  %vm195_vm11 = vcmp.lt.s32.totalorder %v1273_v60, 0  ;;  %v277_v30 = vxor.u32 2147483648, %v276_v62 }
  0x8a   :  { %v477_v54 = vshll.u32 %v476_v17, 23  ;;  %v1532_v47 = vmul.f32 -2.0, %v152_v19  ;;  %v474_v24 = vor.u32 %v473_v16, %v472_v12  ;;  %v379_v53 = vmul.f32 %v378_v42, %v376_v20 }
  0x8b   :  { %v563_v34 = vadd.s32 536870912, %v562_v28  ;;  %1163 = vrsqrt.f32 %v1528_v26  ;;  %vm1539_vm12 = vcmp.le.f32.partialorder %v193_v31, 0.7853982  ;;  %v278_v45 = vsel %vm195_vm11, %v277_v30, %v276_v62 }
  0x8c   :  { %v478_v49 = vor.u32 4788187, %v477_v54  ;;  %1165 = vrsqrt.f32 %v1532_v47  ;;  %v481_v41 = vcvt.s32.f32 %v474_v24  ;;  %v380_v44 = vxor.u32 2147483648, %v379_v53 }
  0x8d   :  { %v1535_v39 = vshrl.u32 %v563_v34, 30  ;;  %v281_v2 = vsel %vm1539_vm12, %v1273_v60, %v278_v45  ;;  %vm298_vm13 = vcmp.lt.s32.totalorder %v1275_v0, 0  ;;  %v279_v37 = vsub.s32 4, %v1361_v51 }
  0x8e   :  { %v479_v55 = vand.u32 2147483647, %v478_v49  ;;  %vm1556_vm14 = vcmp.le.f32.partialorder %v296_v32, 0.7853982  ;;  %1167 = vcosq.f32 %v281_v2  ;;  %v381_v43 = vsel %vm298_vm13, %v380_v44, %v379_v53 }
  0x8f   :  { %v565_v61 = vshll.u32 %v1535_v39, 30  ;;  %vm1565_vm15 = vcmp.le.f32.partialorder %v399_v59, 0.7853982  ;;  %vm401_vm0 = vcmp.lt.s32.totalorder %v1279_v22, 0  ;;  %vm159_vm1 = vcmp.eq.f32.partialorder %v1516_v8, inf }
  0x90   :  { %v482_v29 = vmul.f32 %v481_v41, %v479_v55  ;;  %1169 = vsinq.f32 %v281_v2  ;;  %vm161_vm2 = vcmp.eq.f32.partialorder %v1516_v8, 0.0  ;;  %v162_v57 = vand.u32 2147483648, %v1516_v8 }
  0x91   :  { %v1160_v58 = vpop.eup %1159  ;;  %v1551_v31 = vsub.s32 %v562_v28, %v565_v61  ;;  %vm166_vm3 = vcmp.eq.f32.partialorder %v1520_v15, inf  ;;  %v280_v33 = vsel %vm195_vm11, %v279_v37, %v1361_v51  ;;  %v384_v23 = vsel %vm1556_vm14, %v1275_v0, %v381_v43 }
  0x92   :  { %v158_v32 = vmul.f32 %v1160_v58, %v1516_v8  ;;  %v483_v7 = vxor.u32 2147483648, %v482_v29  ;;  %vm168_vm4 = vcmp.eq.f32.partialorder %v1520_v15, 0.0  ;;  %v169_v46 = vand.u32 2147483648, %v1520_v15 }
  0x93   :  { %v1162_v3 = vpop.eup %1161  ;;  %v568_v35 = vsub.s32 0, %v1551_v31  ;;  %vm173_vm5 = vcmp.eq.f32.partialorder %v1528_v26, inf  ;;  %v176_v10 = vand.u32 2147483648, %v1528_v26  ;;  %vm175_vm6 = vcmp.eq.f32.partialorder %v1528_v26, 0.0 }
  0x94   :  { %v165_v25 = vmul.f32 %v1162_v3, %v1520_v15  ;;  %v160_v11 = vsel %vm159_vm1, %v1516_v8, %v158_v32  ;;  %vm180_vm7 = vcmp.eq.f32.partialorder %v1532_v47, inf  ;;  %v382_v51 = vsub.s32 4, %v1406_v18 }
  0x95   :  { %v1107_v21 = vmin.u32 %v568_v35, %v1551_v31  ;;  %v1164_v59 = vpop.eup %1163  ;;  %vm182_vm8 = vcmp.eq.f32.partialorder %v1532_v47, 0.0  ;;  %v282_v62 = vsel %vm1539_vm12, 0, %v280_v33  ;;  %1171 = vcosq.f32 %v384_v23 }
  0x96   :  { %v1166_v50 = vpop.eup %1165  ;;  %v167_v14 = vsel %vm166_vm3, %v1520_v15, %v165_v25  ;;  %v172_v56 = vmul.f32 %v1164_v59, %v1528_v26  ;;  %1173 = vsinq.f32 %v384_v23  ;;  %v484_v17 = vsel %vm401_vm0, %v483_v7, %v482_v29 }
  0x97   :  { %v570_v9 = vclz %v1107_v21  ;;  %v558_v27 = vadd.s32 %v1512_v6, %v1508_v36  ;;  %v179_v19 = vmul.f32 %v1166_v50, %v1532_v47  ;;  %v183_v12 = vand.u32 2147483648, %v1532_v47 }
  0x98   :  { %v1606_v16 = vand.u32 3, %v282_v62  ;;  %v383_v42 = vsel %vm298_vm13, %v382_v51, %v1406_v18  ;;  %v1168_v30 = vpop.eup %1167  ;;  %v163_v36 = vsel %vm161_vm2, %v162_v57, %v160_v11  ;;  %v170_v6 = vsel %vm168_vm4, %v169_v46, %v167_v14 }
  0x99   :  { %v1108_v13 = vadd.s32 4294967294, %v570_v9  ;;  %v485_v24 = vsub.s32 4, %v1464_v5  ;;  %v487_v49 = vsel %vm1565_vm15, %v1279_v22, %v484_v17  ;;  %v174_v18 = vsel %vm173_vm5, %v1528_v26, %v172_v56 }
  0x9a   :  { %v1170_v34 = vpop.eup %1169  ;;  %vm504_vm10 = vcmp.lt.s32.totalorder %v1386_v38, 0  ;;  %v702_v8 = vadd.s32 3, %v282_v62  ;;  %v181_v15 = vsel %vm180_vm7, %v1532_v47, %v179_v19  ;;  %vm288_vm11 = vcmp.eq.s32.totalorder %v1606_v16, 0 }
  0x9b   :  { %vm1109_vm9 = vcmp.lt.s32.totalorder %v1108_v13, 0  ;;  %vm291_vm12 = vcmp.eq.s32.totalorder %v1606_v16, 2  ;;  %v385_v45 = vsel %vm1556_vm14, 0, %v383_v42  ;;  %1175 = vcosq.f32 %v487_v49 }
  0x9c   :  { %v573_v20 = vsel %vm1109_vm9, 0, %v1108_v13  ;;  %v1631_v55 = vand.u32 3, %v385_v45  ;;  %v289_v44 = vxor.u32 2147483648, %v1170_v34  ;;  %v292_v58 = vxor.u32 2147483648, %v1168_v30 }
  0x9d   :  { %v574_v54 = vsub.s32 32, %v573_v20  ;;  %v575_v63 = vshll.u32 %v1551_v31, %v573_v20  ;;  %v578_v28 = vsub.s32 4294967266, %v573_v20  ;;  %v486_v2 = vsel %vm401_vm0, %v485_v24, %v1464_v5 }
  0x9e   :  { %1177 = vsinq.f32 %v487_v49  ;;  %v703_v37 = vand.u32 3, %v702_v8  ;;  %v806_v29 = vadd.s32 3, %v385_v45  ;;  %v1638_v4 = vsel %vm175_vm6, %v176_v10, %v174_v18 }
  0x9f   :  { %v576_v53 = vshrl.u32 %v558_v27, %v574_v54  ;;  %v579_v52 = vadd.s32 127, %v578_v28  ;;  %v1172_v35 = vpop.eup %1171  ;;  %v1640_v43 = vmul.f32 0.125, %v163_v36  ;;  %v1642_v32 = vmul.f32 0.125, %v170_v6 }
  0xa0   :  { %v588_v21 = vsub.s32 4, %v1535_v39  ;;  %v1174_v57 = vpop.eup %1173  ;;  %v1647_v5 = vsel %vm182_vm8, %v183_v12, %v181_v15  ;;  %v488_v25 = vsel %vm1565_vm15, 0, %v486_v2  ;;  %vm1653_vm13 = vcmp.le.f32.partialorder %v502_v40, 0.7853982 }
  0xa1   :  { %v577_v41 = vor.u32 %v576_v53, %v575_v63  ;;  %v580_v61 = vshll.u32 %v579_v52, 23  ;;  %vm285_vm14 = vweird.f32 %v1273_v60  ;;  %vm287_vm0 = vcmp.lt.s32.totalorder %v1606_v16, 2 }
  0xa2   :  { %v290_v33 = vsel %vm288_vm11, %v1168_v30, %v289_v44  ;;  %v293_v47 = vsel %vm291_vm12, %v292_v58, %v1170_v34  ;;  %vm390_vm1 = vcmp.lt.s32.totalorder %v1631_v55, 2  ;;  %vm388_vm15 = vweird.f32 %v1275_v0 }
  0xa3   :  { %v581_v31 = vor.u32 4788187, %v580_v61  ;;  %v584_v3 = vcvt.s32.f32 %v577_v41  ;;  %vm705_vm2 = vcmp.eq.s32.totalorder %v703_v37, 0  ;;  %vm708_vm3 = vcmp.eq.s32.totalorder %v703_v37, 2 }
  0xa4   :  { %v807_v40 = vand.u32 3, %v806_v29  ;;  %v392_v23 = vxor.u32 2147483648, %v1174_v57  ;;  %v395_v7 = vxor.u32 2147483648, %v1172_v35  ;;  %v589_v9 = vsel %vm504_vm10, %v588_v21, %v1535_v39 }
  0xa5   :  { %v582_v59 = vand.u32 2147483647, %v581_v31  ;;  %v910_v46 = vadd.s32 3, %v488_v25  ;;  %vm391_vm4 = vcmp.eq.s32.totalorder %v1631_v55, 0  ;;  %vm394_vm5 = vcmp.eq.s32.totalorder %v1631_v55, 2  ;;  %v1176_v14 = vpop.eup %1175 }
  0xa6   :  { %v492_v10 = vand.u32 3, %v488_v25  ;;  %v294_v11 = vsel %vm287_vm0, %v290_v33, %v293_v47  ;;  %vm704_vm6 = vcmp.lt.s32.totalorder %v703_v37, 2  ;;  %v707_v51 = vsel %vm705_vm2, %v1168_v30, %v289_v44 }
  0xa7   :  { %v585_v48 = vmul.f32 %v584_v3, %v582_v59  ;;  %v710_v13 = vsel %vm708_vm3, %v292_v58, %v1170_v34  ;;  %v591_v39 = vsel %vm1653_vm13, 0, %v589_v9  ;;  %vm809_vm7 = vcmp.eq.s32.totalorder %v807_v40, 0 }
  0xa8   :  { %vm812_vm8 = vcmp.eq.s32.totalorder %v807_v40, 2  ;;  %v1178_v62 = vpop.eup %1177  ;;  %v393_v17 = vsel %vm391_vm4, %v1172_v35, %v392_v23  ;;  %v396_v27 = vsel %vm394_vm5, %v395_v7, %v1174_v57  ;;  %v911_v12 = vand.u32 3, %v910_v46 }
  0xa9   :  { %v586_v50 = vxor.u32 2147483648, %v585_v48  ;;  %v711_v16 = vsel %vm704_vm6, %v707_v51, %v710_v13  ;;  %vm808_vm9 = vcmp.lt.s32.totalorder %v807_v40, 2  ;;  %v811_v20 = vsel %vm809_vm7, %v1172_v35, %v392_v23 }
  0xaa   :  { %v814_v42 = vsel %vm812_vm8, %v395_v7, %v1174_v57  ;;  %v1014_v54 = vadd.s32 3, %v591_v39  ;;  %v397_v63 = vsel %vm390_vm1, %v393_v17, %v396_v27  ;;  %v495_v28 = vxor.u32 2147483648, %v1178_v62 }
  0xab   :  { %v587_v56 = vsel %vm504_vm10, %v586_v50, %v585_v48  ;;  %vm493_vm10 = vcmp.lt.s32.totalorder %v492_v10, 2  ;;  %v498_v30 = vxor.u32 2147483648, %v1176_v14  ;;  %vm494_vm11 = vcmp.eq.s32.totalorder %v492_v10, 0 }
  0xac   :  { %v590_v19 = vsel %vm1653_vm13, %v1386_v38, %v587_v56  ;;  %vm497_vm12 = vcmp.eq.s32.totalorder %v492_v10, 2  ;;  %vm913_vm0 = vcmp.eq.s32.totalorder %v911_v12, 0  ;;  %vm916_vm2 = vcmp.eq.s32.totalorder %v911_v12, 2  ;;  %v1029_v56 = vld [vmem:[#allocation4] sm:$0xff] }
  0xad   :  { %1179 = vcosq.f32 %v590_v19  ;;  %v295_v36 = vsel %vm285_vm14, nan, %v294_v11  ;;  %v712_v6 = vsel %vm285_vm14, nan, %v711_v16  ;;  %v815_v24 = vsel %vm808_vm9, %v811_v20, %v814_v42 }
  0xae   :  { %1181 = vsinq.f32 %v590_v19  ;;  %v1238_v49 = vmov 1983009808   ;;  %v398_v18 = vsel %vm388_vm15, nan, %v397_v63  ;;  %v595_v53 = vand.u32 3, %v591_v39  ;;  %v1030_v39 = vld [vmem:[#allocation4 + $0x8] sm:$0xff] }
  0xaf   :  { %v1038_v34 = vunpack.c.l.s4 %v1238_v49  ;;  %vm912_vm13 = vcmp.lt.s32.totalorder %v911_v12, 2  ;;  %v1015_v52 = vand.u32 3, %v1014_v54  ;;  %v496_v8 = vsel %vm494_vm11, %v1176_v14, %v495_v28 }
  0xb0   :  { %v499_v15 = vsel %vm497_vm12, %v498_v30, %v1178_v62  ;;  %v915_v45 = vsel %vm913_vm0, %v1176_v14, %v495_v28  ;;  %v918_v55 = vsel %vm916_vm2, %v498_v30, %v1178_v62  ;;  %v816_v41 = vsel %vm388_vm15, nan, %v815_v24 }
  0xb1   :  { %v187_v61 = vmul.f32 0.125, %v1638_v4  ;;  %v188_v60 = vmul.f32 0.125, %v1647_v5  ;;  %vm491_vm14 = vweird.f32 %v1279_v22  ;;  %v605_v44 = vmul.f32 %v295_v36, %v1640_v43 }
  0xb2   :  { %v500_v58 = vsel %vm493_vm10, %v496_v8, %v499_v15  ;;  %v606_v2 = vmul.f32 %v398_v18, %v1642_v32  ;;  %v919_v31 = vsel %vm912_vm13, %v915_v45, %v918_v55  ;;  %v1025_v3 = vmul.f32 %v712_v6, %v1640_v43 }
  0xb3   :  { %vm600_vm1 = vcmp.eq.s32.totalorder %v595_v53, 2  ;;  %vm1020_vm3 = vcmp.eq.s32.totalorder %v1015_v52, 2  ;;  %v1026_v0 = vmul.f32 %v816_v41, %v1642_v32  ;;  %v1039_v29 = vunpack.c.0.s8 %v1038_v34 }
  0xb4   :  { %vm596_vm15 = vcmp.lt.s32.totalorder %v595_v53, 2  ;;  %vm597_vm4 = vcmp.eq.s32.totalorder %v595_v53, 0  ;;  %vm1017_vm5 = vcmp.eq.s32.totalorder %v1015_v52, 0  ;;  %v501_v21 = vsel %vm491_vm14, nan, %v500_v58 }
  0xb5   :  { %v920_v5 = vsel %vm491_vm14, nan, %v919_v31  ;;  %vm1016_vm6 = vcmp.lt.s32.totalorder %v1015_v52, 2  ;;  %vm594_vm7 = vweird.f32 %v1386_v38  ;;  %v1035_v26 = vcombine.low %v605_v44, %v606_v2 }
  0xb6   :  { %v1042_v33 = vsub.s32 %v1039_v29, %v1270_v1  ;;  %v1059_v47 = vcombine.low %v1025_v3, %v1026_v0  ;;  %v607_v40 = vmul.f32 %v501_v21, %v187_v61  ;;  %v1027_v7 = vmul.f32 %v920_v5, %v187_v61 }
  0xb7   :  { %v1180_v37 = vpop.eup %1179 }
  0xb8   :  { %v1182_v35 = vpop.eup %1181  ;;  %v601_v4 = vxor.u32 2147483648, %v1180_v37  ;;  %v1043_v11 = vrot.slane %v1035_v26, %v1042_v33  ;;  %v1067_v51 = vrot.slane %v1059_v47, %v1042_v33 }
  0xb9   :  { %v598_v57 = vxor.u32 2147483648, %v1182_v35 }
  0xba   :  { %v602_v43 = vsel %vm600_vm1, %v601_v4, %v1182_v35  ;;  %v1022_v25 = vsel %vm1020_vm3, %v601_v4, %v1182_v35 }
  0xbb   :  { %v599_v32 = vsel %vm597_vm4, %v1180_v37, %v598_v57  ;;  %v1019_v59 = vsel %vm1017_vm5, %v1180_v37, %v598_v57 }
  0xbc   :  { %v603_v48 = vsel %vm596_vm15, %v599_v32, %v602_v43  ;;  %v1023_v23 = vsel %vm1016_vm6, %v1019_v59, %v1022_v25 }
  0xbd   :  { %v604_v9 = vsel %vm594_vm7, nan, %v603_v48  ;;  %v1024_v46 = vsel %vm594_vm7, nan, %v1023_v23 }
  0xbe   :  { %v608_v22 = vmul.f32 %v604_v9, %v188_v60  ;;  %v1028_v10 = vmul.f32 %v1024_v46, %v188_v60 }
  0xc0   :  { %v1036_v50 = vcombine.low %v607_v40, %v608_v22  ;;  %v1060_v38 = vcombine.low %v1027_v7, %v1028_v10 }
  0xc2   :  { %v1050_v13 = vrot.slane %v1036_v50, %v1042_v33  ;;  %v1074_v14 = vrot.slane %v1060_v38, %v1042_v33 }
  0xc4   :  { %v1051_v1 = vcombine.low %v1043_v11, %v1050_v13  ;;  %v1075_v62 = vcombine.low %v1067_v51, %v1074_v14 }
  0xc6   :  { %v1053_v17 = vmul.f32 %v1051_v1, %v1029_v56  ;;  %v1077_v27 = vmul.f32 %v1075_v62, %v1030_v39 }
  0xc8   :  { %1054 = vst [vmem:[#allocation7] sm:$0xff] %v1053_v17  ;;  %1078 = vst [vmem:[#allocation7 + $0x8] sm:$0xff] %v1077_v27 }
  0xc9   :  { %1216 = shalt.err (!%p1213_p12)
}
  0xca   :  { %s1217_s27 = scalar_lea.hbm %s1718_s2, 256 }
  0xcb   :  { %p1218_p13 = scmp.ne.s32.totalorder %s1718_s2, %s1217_s27  ;;  %p1221_p0 = scmp.lt.u32.totalorder %s1217_s27, %s1718_s2 }
  0xcd   :  { %p1223_p1 = pnand %p1221_p0, %p1218_p13 }
  0xcf   :  { %1226 = shalt.err (!%p1223_p1)
}
  0xd0   :  { %1088 = dma.vmem_to_hbm [thread:$0]  %s1086_s1, 256, %s1718_s2, [#allocation6]  }
  0xd1   :  { %1229 = dma.done.wait [#allocation6], 256  }
  0xd2   :  { %1230 = vsyncadd [#allocation6], 4294967040 }
  0xd3   :  { %1092 = vsyncpa [#allocation5], 1 }
  0xd4   :  { %1093 = vsyncpa [#allocation6], 1 }

</bundles_post_ra>
